<compile_context>
chip_gen: v5e
topology: v5e:2x2
jax: 0.10.0
libtpu: 0.0.40
codegen_flags: <defaults>
</compile_context>

<pallas_src>
from functools import partial

import jax
import jax.numpy as jnp
from jax.experimental import pallas as pl
from jax.experimental.pallas import tpu as pltpu

EPS = 1e-5
LANE = 128


def _round_up(n, m):
    return ((n + m - 1) // m) * m


def bottleneck_kernel(x_ref,
                      w1_ref, b1_ref,
                      w2_ref, b2_ref,
                      w3_ref, b3_ref,
                      o_ref):
    # fc1 (+ folded bn1) + relu.  Read the x tile directly here and again at
    # the residual (don't hold it live across all three matmuls -> fewer vregs
    # pinned, reload uses slack vld slots).
    h = jnp.dot(x_ref[...], w1_ref[...],
                preferred_element_type=jnp.float32) + b1_ref[...]
    h = jnp.maximum(h, 0.0)

    # fc2 (+ folded bn2) + relu
    h = jnp.dot(h, w2_ref[...],
                preferred_element_type=jnp.float32) + b2_ref[...]
    h = jnp.maximum(h, 0.0)

    # dropout(p=0.2): identity in eval mode.

    # fc3 (+ folded bn3) + residual + relu
    h = jnp.dot(h, w3_ref[...],
                preferred_element_type=jnp.float32) + b3_ref[...]
    o_ref[...] = jnp.maximum(h + x_ref[...], 0.0).astype(o_ref.dtype)


def prepare_params(p, dtype=jnp.float32):
    """Fold eval-mode BatchNorm into each Linear and zero-pad feature dims to
    the 128-lane width.  Call ONCE at init; the result is reused every forward
    call (hoists ~10 tiny XLA ops + their HBM traffic out of the hot path).

    dtype: storage dtype of the padded weights/biases.  Use jnp.bfloat16 on
    HBM-bandwidth-bound chips (esp. v5e); accumulation stays f32 in-kernel.
    """
    def fold(w, b, g, be, rm, rv):
        # (x W + b) * s + t  ==  x (W * s) + (b * s + (be - rm * s))
        s = g * jax.lax.rsqrt(rv + EPS)
        return w * s[None, :], b * s + (be - rm * s)

    w1, b1 = fold(p["w1"], p["b1"], p["g1"], p["be1"], p["rm1"], p["rv1"])
    w2, b2 = fold(p["w2"], p["b2"], p["g2"], p["be2"], p["rm2"], p["rv2"])
    w3, b3 = fold(p["w3"], p["b3"], p["g3"], p["be3"], p["rm3"], p["rv3"])

    D, H = p["w1"].shape
    Dp = _round_up(D, LANE)
    Hp = _round_up(H, LANE)

    def pad2(a, r, c):
        return jnp.pad(a, ((0, r - a.shape[0]), (0, c - a.shape[1]))).astype(dtype)

    prep = {
        "w1": pad2(w1, Dp, Hp), "b1": pad2(b1.reshape(1, -1), 1, Hp),
        "w2": pad2(w2, Hp, Hp), "b2": pad2(b2.reshape(1, -1), 1, Hp),
        "w3": pad2(w3, Hp, Dp), "b3": pad2(b3.reshape(1, -1), 1, Dp),
    }
    prep = jax.tree_util.tree_map(jax.block_until_ready, prep)
    return prep, D, Dp


@partial(jax.jit, static_argnames=("tb",))
def bottleneck_block(x, prep, *, tb=1024):
    """x: (B, input_dim) f32.  prep: output of prepare_params (padded, folded).

    Tiles over batch.  Per grid step VMEM ~= tb * Dp * 4B * 2 (x + out,
    double-buffered) + resident weights; even tb=2048 stays well under the
    scoped-VMEM default on v5e/v6e/v7x.  If you push tb past ~8k rows set
    pltpu.CompilerParams(vmem_limit_bytes=...) and re-derive for v7x (64 MiB).
    """
    B, D = x.shape
    Dp = prep["w1"].shape[0]

    # Batch tile: one big tile for small batches, tb-row tiles otherwise.
    tb = min(tb, _round_up(B, 8))
    # v7x megacore: if the whole (large) batch fits a single tile, halve it so
    # the "parallel" grid has >= 2 steps and both TensorCores are used.
    if _round_up(B, tb) // tb < 2 and B >= 1024:
        tb = _round_up(-(-B // 2), 8)
    Bp = _round_up(B, tb)

    # Fast path: skip the pad / slice HBM round-trips when already aligned.
    need_pad = (Bp != B) or (Dp != D)
    if need_pad:
        # Padded weight rows/cols, bias entries and x columns are zero, so the
        # padded output lanes are relu(0) = 0 and are sliced off below.
        xk = jnp.pad(x, ((0, Bp - B), (0, Dp - D)))
    else:
        xk = x

    def full_spec(a):
        # whole (small) parameter array resident in VMEM, same block every step
        return pl.BlockSpec(a.shape, lambda i: (0,) * a.ndim)

    out = pl.pallas_call(
        bottleneck_kernel,
        out_shape=jax.ShapeDtypeStruct((Bp, Dp), x.dtype),
        grid=(Bp // tb,),
        in_specs=[pl.BlockSpec((tb, Dp), lambda i: (i, 0)),
                  full_spec(prep["w1"]), full_spec(prep["b1"]),
                  full_spec(prep["w2"]), full_spec(prep["b2"]),
                  full_spec(prep["w3"]), full_spec(prep["b3"])],
        out_specs=pl.BlockSpec((tb, Dp), lambda i: (i, 0)),
        # Share HBM between the padded x and the output when we own the padded
        # buffer (each grid step reads and writes the same tile index, and the
        # residual read precedes the store, so aliasing is race-free).
        input_output_aliases={0: 0} if need_pad else {},
        compiler_params=pltpu.CompilerParams(dimension_semantics=("parallel",)),
    )(xk, prep["w1"], prep["b1"], prep["w2"], prep["b2"],
      prep["w3"], prep["b3"])

    if need_pad:
        out = out[:B, :D]
    return out


def ref_forward(x, p):
    """Pure-JAX reference (eval-mode PyTorch semantics)."""
    def bn(h, g, be, rm, rv):
        return (h - rm) / jnp.sqrt(rv + EPS) * g + be
    h = x @ p["w1"] + p["b1"]
    h = jax.nn.relu(bn(h, p["g1"], p["be1"], p["rm1"], p["rv1"]))
    h = h @ p["w2"] + p["b2"]
    h = jax.nn.relu(bn(h, p["g2"], p["be2"], p["rm2"], p["rv2"]))
    h = h @ p["w3"] + p["b3"]
    h = bn(h, p["g3"], p["be3"], p["rm3"], p["rv3"])
    return jax.nn.relu(h + x)


if __name__ == "__main__":
    B, D_IN, D_BN = 16, 64, 32   # batch, input_dim, bottleneck_dim

    key = jax.random.PRNGKey(0)
    ks = jax.random.split(key, 20)

    def w(k, shape, scale=0.1):
        return (scale * jax.random.normal(k, shape)).astype(jnp.float32)

    params = {
        # Linear params, weights stored as (in, out)
        "w1": w(ks[0], (D_IN, D_BN)), "b1": w(ks[1], (D_BN,)),
        "w2": w(ks[2], (D_BN, D_BN)), "b2": w(ks[3], (D_BN,)),
        "w3": w(ks[4], (D_BN, D_IN)), "b3": w(ks[5], (D_IN,)),
        # BatchNorm1d params + running stats (deterministic synthetic values)
        "g1": 1.0 + w(ks[6], (D_BN,)), "be1": w(ks[7], (D_BN,)),
        "rm1": w(ks[8], (D_BN,)), "rv1": 1.0 + 0.1 * jax.random.uniform(ks[9], (D_BN,)),
        "g2": 1.0 + w(ks[10], (D_BN,)), "be2": w(ks[11], (D_BN,)),
        "rm2": w(ks[12], (D_BN,)), "rv2": 1.0 + 0.1 * jax.random.uniform(ks[13], (D_BN,)),
        "g3": 1.0 + w(ks[14], (D_IN,)), "be3": w(ks[15], (D_IN,)),
        "rm3": w(ks[16], (D_IN,)), "rv3": 1.0 + 0.1 * jax.random.uniform(ks[17], (D_IN,)),
    }
    params = {k: v.astype(jnp.float32) for k, v in params.items()}

    x = jax.random.normal(ks[18], (B, D_IN), dtype=jnp.float32)

    # Fold + pad once at init; reuse across forward calls.
    prep, _, _ = prepare_params(params)

    out = bottleneck_block(x, prep, tb=1024)
    out = jax.block_until_ready(out)

    ref = ref_forward(x, params)
    assert out.shape == (B, D_IN) and out.dtype == jnp.float32
    assert jnp.allclose(out, ref, atol=1e-4, rtol=1e-4), "mismatch vs JAX reference"

    print("KERNEL_OK")
</pallas_src>

<mosaic_0001>
module attributes {stable_mosaic.version = 11 : i64} {
  func.func @bottleneck_kernel(%arg0: i32, %arg1: memref<16x128xf32, #tpu.memory_space<vmem>>, %arg2: memref<128x128xf32, #tpu.memory_space<vmem>>, %arg3: memref<1x128xf32, #tpu.memory_space<vmem>>, %arg4: memref<128x128xf32, #tpu.memory_space<vmem>>, %arg5: memref<1x128xf32, #tpu.memory_space<vmem>>, %arg6: memref<128x128xf32, #tpu.memory_space<vmem>>, %arg7: memref<1x128xf32, #tpu.memory_space<vmem>>, %arg8: memref<16x128xf32, #tpu.memory_space<vmem>>) attributes {dimension_semantics = [#tpu.dimension_semantics<parallel>], iteration_bounds = array<i64: 1>, scalar_prefetch = 0 : i64, scratch_operands = 0 : i64, tpu.core_type = #tpu.core_type<tc>, window_params = [{transform_indices = @transform_0, window_bounds = array<i64: 16, 128>}, {pipeline_mode = #tpu.pipeline_mode<synchronous>, transform_indices = @transform_1, window_bounds = array<i64: 128, 128>}, {pipeline_mode = #tpu.pipeline_mode<synchronous>, transform_indices = @transform_2, window_bounds = array<i64: 1, 128>}, {pipeline_mode = #tpu.pipeline_mode<synchronous>, transform_indices = @transform_3, window_bounds = array<i64: 128, 128>}, {pipeline_mode = #tpu.pipeline_mode<synchronous>, transform_indices = @transform_4, window_bounds = array<i64: 1, 128>}, {pipeline_mode = #tpu.pipeline_mode<synchronous>, transform_indices = @transform_5, window_bounds = array<i64: 128, 128>}, {pipeline_mode = #tpu.pipeline_mode<synchronous>, transform_indices = @transform_6, window_bounds = array<i64: 1, 128>}, {transform_indices = @transform_7, window_bounds = array<i64: 16, 128>}]} {
    %c0 = arith.constant 0 : index
    %c0_0 = arith.constant 0 : index
    %0 = vector.load %arg1[%c0, %c0_0] : memref<16x128xf32, #tpu.memory_space<vmem>>, vector<16x128xf32>
    %c0_1 = arith.constant 0 : index
    %c0_2 = arith.constant 0 : index
    %1 = vector.load %arg2[%c0_1, %c0_2] : memref<128x128xf32, #tpu.memory_space<vmem>>, vector<128x128xf32>
    %cst = arith.constant dense<0.000000e+00> : vector<16x128xf32>
    %2 = tpu.matmul %0, %1, %cst {dimension_numbers = #tpu.dot_dimension_numbers<[1], [0], [0], [1], [0, 0, 1, 1], [], []>} : vector<16x128xf32>, vector<128x128xf32>, vector<16x128xf32> -> vector<16x128xf32>
    %c0_3 = arith.constant 0 : index
    %c0_4 = arith.constant 0 : index
    %3 = vector.load %arg3[%c0_3, %c0_4] : memref<1x128xf32, #tpu.memory_space<vmem>>, vector<1x128xf32>
    %4 = vector.broadcast %3 : vector<1x128xf32> to vector<16x128xf32>
    %5 = arith.addf %2, %4 : vector<16x128xf32>
    %cst_5 = arith.constant 0.000000e+00 : f32
    %6 = vector.broadcast %cst_5 : f32 to vector<16x128xf32>
    %7 = arith.maximumf %5, %6 : vector<16x128xf32>
    %c0_6 = arith.constant 0 : index
    %c0_7 = arith.constant 0 : index
    %8 = vector.load %arg4[%c0_6, %c0_7] : memref<128x128xf32, #tpu.memory_space<vmem>>, vector<128x128xf32>
    %cst_8 = arith.constant dense<0.000000e+00> : vector<16x128xf32>
    %9 = tpu.matmul %7, %8, %cst_8 {dimension_numbers = #tpu.dot_dimension_numbers<[1], [0], [0], [1], [0, 0, 1, 1], [], []>} : vector<16x128xf32>, vector<128x128xf32>, vector<16x128xf32> -> vector<16x128xf32>
    %c0_9 = arith.constant 0 : index
    %c0_10 = arith.constant 0 : index
    %10 = vector.load %arg5[%c0_9, %c0_10] : memref<1x128xf32, #tpu.memory_space<vmem>>, vector<1x128xf32>
    %11 = vector.broadcast %10 : vector<1x128xf32> to vector<16x128xf32>
    %12 = arith.addf %9, %11 : vector<16x128xf32>
    %cst_11 = arith.constant 0.000000e+00 : f32
    %13 = vector.broadcast %cst_11 : f32 to vector<16x128xf32>
    %14 = arith.maximumf %12, %13 : vector<16x128xf32>
    %c0_12 = arith.constant 0 : index
    %c0_13 = arith.constant 0 : index
    %15 = vector.load %arg6[%c0_12, %c0_13] : memref<128x128xf32, #tpu.memory_space<vmem>>, vector<128x128xf32>
    %cst_14 = arith.constant dense<0.000000e+00> : vector<16x128xf32>
    %16 = tpu.matmul %14, %15, %cst_14 {dimension_numbers = #tpu.dot_dimension_numbers<[1], [0], [0], [1], [0, 0, 1, 1], [], []>} : vector<16x128xf32>, vector<128x128xf32>, vector<16x128xf32> -> vector<16x128xf32>
    %c0_15 = arith.constant 0 : index
    %c0_16 = arith.constant 0 : index
    %17 = vector.load %arg7[%c0_15, %c0_16] : memref<1x128xf32, #tpu.memory_space<vmem>>, vector<1x128xf32>
    %18 = vector.broadcast %17 : vector<1x128xf32> to vector<16x128xf32>
    %19 = arith.addf %16, %18 : vector<16x128xf32>
    %c0_17 = arith.constant 0 : index
    %c0_18 = arith.constant 0 : index
    %20 = vector.load %arg1[%c0_17, %c0_18] : memref<16x128xf32, #tpu.memory_space<vmem>>, vector<16x128xf32>
    %21 = arith.addf %19, %20 : vector<16x128xf32>
    %cst_19 = arith.constant 0.000000e+00 : f32
    %22 = vector.broadcast %cst_19 : f32 to vector<16x128xf32>
    %23 = arith.maximumf %21, %22 : vector<16x128xf32>
    %c0_20 = arith.constant 0 : index
    %c0_21 = arith.constant 0 : index
    %24 = vector.load %arg8[%c0_20, %c0_21] : memref<16x128xf32, #tpu.memory_space<vmem>>, vector<16x128xf32>
    tpu.vector_store %arg8[%c0_20, %c0_21], %23 {strides = array<i32>} : memref<16x128xf32, #tpu.memory_space<vmem>>, vector<16x128xf32>,
    return
  }
  func.func @transform_0(%arg0: i32) -> (i32, i32) {
    %c0_i32 = arith.constant 0 : i32
    %c0_i32_0 = arith.constant 0 : i32
    return %arg0, %c0_i32 : i32, i32
  }
  func.func @transform_1(%arg0: i32) -> (i32, i32) {
    %c0_i32 = arith.constant 0 : i32
    %c0_i32_0 = arith.constant 0 : i32
    %c0_i32_1 = arith.constant 0 : i32
    return %c0_i32, %c0_i32_0 : i32, i32
  }
  func.func @transform_2(%arg0: i32) -> (i32, i32) {
    %c0_i32 = arith.constant 0 : i32
    %c0_i32_0 = arith.constant 0 : i32
    %c0_i32_1 = arith.constant 0 : i32
    return %c0_i32, %c0_i32_0 : i32, i32
  }
  func.func @transform_3(%arg0: i32) -> (i32, i32) {
    %c0_i32 = arith.constant 0 : i32
    %c0_i32_0 = arith.constant 0 : i32
    %c0_i32_1 = arith.constant 0 : i32
    return %c0_i32, %c0_i32_0 : i32, i32
  }
  func.func @transform_4(%arg0: i32) -> (i32, i32) {
    %c0_i32 = arith.constant 0 : i32
    %c0_i32_0 = arith.constant 0 : i32
    %c0_i32_1 = arith.constant 0 : i32
    return %c0_i32, %c0_i32_0 : i32, i32
  }
  func.func @transform_5(%arg0: i32) -> (i32, i32) {
    %c0_i32 = arith.constant 0 : i32
    %c0_i32_0 = arith.constant 0 : i32
    %c0_i32_1 = arith.constant 0 : i32
    return %c0_i32, %c0_i32_0 : i32, i32
  }
  func.func @transform_6(%arg0: i32) -> (i32, i32) {
    %c0_i32 = arith.constant 0 : i32
    %c0_i32_0 = arith.constant 0 : i32
    %c0_i32_1 = arith.constant 0 : i32
    return %c0_i32, %c0_i32_0 : i32, i32
  }
  func.func @transform_7(%arg0: i32) -> (i32, i32) {
    %c0_i32 = arith.constant 0 : i32
    %c0_i32_0 = arith.constant 0 : i32
    return %arg0, %c0_i32 : i32, i32
  }
}

</mosaic_0001>

<bundles_post_ra>
// kernel: bottleneck_block.1
= control target key start
LH: loop header
LB: loop body
LE: loop exit
PB: predicated region body
PF: predicated region fallthrough
CT: control target
= control target key end

     0   :  { %12 = vsyncpa [#allocation3], 0  ;;  %s403_s0 = inlined_call_operand.vmem [shape: f32[16,128], index: 0, kind: input, shape index: {}, may-alias: {0,7}]   ;;  %s404_s1 = inlined_call_operand.hbm [shape: f32[128,128], index: 1, kind: input, shape index: {}]   ;;  %s405_s2 = inlined_call_operand.vmem [shape: f32[1,128], index: 2, kind: input, shape index: {}]   ;;  %s406_s3 = inlined_call_operand.hbm [shape: f32[128,128], index: 3, kind: input, shape index: {}]   ;;  %s407_s4 = inlined_call_operand.vmem [shape: f32[1,128], index: 4, kind: input, shape index: {}]   ;;  %s408_s5 = inlined_call_operand.hbm [shape: f32[128,128], index: 5, kind: input, shape index: {}]   ;;  %s409_s6 = inlined_call_operand.vmem [shape: f32[1,128], index: 6, kind: input, shape index: {}]   ;;  %s410_s7 = inlined_call_operand.vmem [shape: f32[16,128], index: 7, kind: output, shape index: {}, may-alias: {0,7}]  }
   0x1   :  { %13 = vsyncpa [#allocation5], 0  ;;  %s35_s26 = sshll.u32 %s406_s3, 4  ;;  %s320_s27 = smov [#allocation4]   ;;  %s36_s26 = int_to_ptr.hbm [resolvable:$true] %s35_s26 }
   0x2   :  { %s37_s28 = sshll.u32 %s320_s27, 4  ;;  %s20_s8 = sshll.u32 %s404_s1, 4  ;;  %s38_s28 = int_to_ptr.vmem [resolvable:$true] %s37_s28  ;;  %s21_s8 = int_to_ptr.hbm [resolvable:$true] %s20_s8 }
   0x3   :  { %s321_s9 = smov 128   ;;  %s322_s10 = smov 8  }
   0x4   :  { %43 = dma.hbm_to_vmem [thread:$0]  %s36_s26, 2048, %s38_s28, [#allocation5], %s321_s9, %s321_s9, %s322_s10  }
   0x5   :  { %s323_s11 = smov [#allocation2]   ;;  %s50_s15 = sshll.u32 %s408_s5, 4  ;;  %s51_s15 = int_to_ptr.hbm [resolvable:$true] %s50_s15 }
   0x6   :  { %s22_s12 = sshll.u32 %s323_s11, 4  ;;  %s324_s3 = smov [#allocation6]   ;;  %s23_s12 = int_to_ptr.vmem [resolvable:$true] %s22_s12 }
   0x7   :  { %28 = dma.hbm_to_vmem [thread:$0]  %s21_s8, 2048, %s23_s12, [#allocation3], %s321_s9, %s321_s9, %s322_s10  }
   0x8   :  { %s52_s16 = sshll.u32 %s324_s3, 4  ;;  %s53_s16 = int_to_ptr.vmem [resolvable:$true] %s52_s16 }
   0x9   :  { %58 = dma.hbm_to_vmem [thread:$0]  %s51_s15, 2048, %s53_s16, [#allocation5], %s321_s9, %s321_s9, %s322_s10  }
   0xa   :  { %316 = dma.done.wait [#allocation3], 2048  }
   0xb   :  { %317 = vsyncadd [#allocation3], 4294965248 }
   0xc   :  { %318 = dma.done.wait [#allocation5], 4096  }
   0xd   :  { %319 = vsyncadd [#allocation5], 4294963200  ;;  %v90_v0 = vld [vmem:[#allocation2 + $0x78] sm:$0xff]  ;;  %v89_v1 = vld [vmem:[#allocation2 + $0x70] sm:$0xff] }
   0xe   :  { %95 = vmatpush.msra.mxu0 %v90_v0  ;;  %220 = vmatpush.msra.mxu3 %v90_v0  ;;  %v88_v2 = vld [vmem:[#allocation2 + $0x68] sm:$0xff]  ;;  %v87_v3 = vld [vmem:[#allocation2 + $0x60] sm:$0xff]  ;;  %v86_v4 = vld [vmem:[#allocation2 + $0x58] sm:$0xff] }
   0xf   :  { %v135_v5 = vld [vmem:[#allocation4 + $0x78] sm:$0xff]  ;;  %v134_v6 = vld [vmem:[#allocation4 + $0x70] sm:$0xff]  ;;  %v133_v8 = vld [vmem:[#allocation4 + $0x68] sm:$0xff] }
  0x10   :  { %96 = vmatpush.msra.mxu0 %v89_v1  ;;  %221 = vmatpush.msra.mxu3 %v89_v1  ;;  %v85_v7 = vld [vmem:[#allocation2 + $0x50] sm:$0xff]  ;;  %v84_v9 = vld [vmem:[#allocation2 + $0x48] sm:$0xff]  ;;  %v132_v10 = vld [vmem:[#allocation4 + $0x60] sm:$0xff] }
  0x11   :  { %140 = vmatpush.msra.mxu1 %v135_v5  ;;  %v83_v11 = vld [vmem:[#allocation2 + $0x40] sm:$0xff]  ;;  %v131_v12 = vld [vmem:[#allocation4 + $0x58] sm:$0xff]  ;;  %v130_v14 = vld [vmem:[#allocation4 + $0x50] sm:$0xff] }
  0x12   :  { %97 = vmatpush.msra.mxu0 %v88_v2  ;;  %222 = vmatpush.msra.mxu3 %v88_v2  ;;  %v82_v13 = vld [vmem:[#allocation2 + $0x38] sm:$0xff]  ;;  %v81_v15 = vld [vmem:[#allocation2 + $0x30] sm:$0xff]  ;;  %v129_v16 = vld [vmem:[#allocation4 + $0x48] sm:$0xff] }
  0x13   :  { %141 = vmatpush.msra.mxu1 %v134_v6  ;;  %v80_v17 = vld [vmem:[#allocation2 + $0x28] sm:$0xff]  ;;  %v128_v18 = vld [vmem:[#allocation4 + $0x40] sm:$0xff]  ;;  %v127_v20 = vld [vmem:[#allocation4 + $0x38] sm:$0xff] }
  0x14   :  { %98 = vmatpush.msra.mxu0 %v87_v3  ;;  %223 = vmatpush.msra.mxu3 %v87_v3  ;;  %v79_v19 = vld [vmem:[#allocation2 + $0x20] sm:$0xff]  ;;  %v78_v21 = vld [vmem:[#allocation2 + $0x18] sm:$0xff]  ;;  %v126_v22 = vld [vmem:[#allocation4 + $0x30] sm:$0xff] }
  0x15   :  { %142 = vmatpush.msra.mxu1 %v133_v8  ;;  %v77_v23 = vld [vmem:[#allocation2 + $0x10] sm:$0xff]  ;;  %v125_v24 = vld [vmem:[#allocation4 + $0x28] sm:$0xff]  ;;  %v124_v26 = vld [vmem:[#allocation4 + $0x20] sm:$0xff] }
  0x16   :  { %99 = vmatpush.msra.mxu0 %v86_v4  ;;  %224 = vmatpush.msra.mxu3 %v86_v4  ;;  %v76_v25 = vld [vmem:[#allocation2 + $0x8] sm:$0xff]  ;;  %v75_v27 = vld [vmem:[#allocation2] sm:$0xff]  ;;  %v123_v30 = vld [vmem:[#allocation4 + $0x18] sm:$0xff] }
  0x17   :  { %143 = vmatpush.msra.mxu1 %v132_v10  ;;  %v377_v28 = vld [vmem:[%s403_s0] sm:$0xff]  ;;  %v382_v29 = vld [vmem:[%s403_s0 + $0x8] sm:$0xff]  ;;  %v122_v31 = vld [vmem:[#allocation4 + $0x10] sm:$0xff] }
  0x18   :  { %100 = vmatpush.msra.mxu0 %v85_v7  ;;  %225 = vmatpush.msra.mxu3 %v85_v7  ;;  %v121_v32 = vld [vmem:[#allocation4 + $0x8] sm:$0xff]  ;;  %v120_v33 = vld [vmem:[#allocation4] sm:$0xff]  ;;  %v180_v34 = vld [vmem:[#allocation6 + $0x78] sm:$0xff] }
  0x19   :  { %144 = vmatpush.msra.mxu1 %v131_v12  ;;  %v179_v35 = vld [vmem:[#allocation6 + $0x70] sm:$0xff]  ;;  %185 = vmatpush.msra.mxu2 %v180_v34  ;;  %v178_v36 = vld [vmem:[#allocation6 + $0x68] sm:$0xff]  ;;  %v177_v37 = vld [vmem:[#allocation6 + $0x60] sm:$0xff] }
  0x1a   :  { %101 = vmatpush.msra.mxu0 %v84_v9  ;;  %226 = vmatpush.msra.mxu3 %v84_v9  ;;  %v176_v38 = vld [vmem:[#allocation6 + $0x58] sm:$0xff]  ;;  %v175_v39 = vld [vmem:[#allocation6 + $0x50] sm:$0xff]  ;;  %v174_v40 = vld [vmem:[#allocation6 + $0x48] sm:$0xff] }
  0x1b   :  { %145 = vmatpush.msra.mxu1 %v130_v14  ;;  %186 = vmatpush.msra.mxu2 %v179_v35  ;;  %v173_v41 = vld [vmem:[#allocation6 + $0x40] sm:$0xff]  ;;  %v172_v42 = vld [vmem:[#allocation6 + $0x38] sm:$0xff]  ;;  %v171_v44 = vld [vmem:[#allocation6 + $0x30] sm:$0xff] }
  0x1c   :  { %102 = vmatpush.msra.mxu0 %v83_v11  ;;  %227 = vmatpush.msra.mxu3 %v83_v11  ;;  %v241_v43 = vld [vmem:[%s405_s2] ss:$0 sm:$0xff]  ;;  %v170_v45 = vld [vmem:[#allocation6 + $0x28] sm:$0xff]  ;;  %v168_v50 = vld [vmem:[#allocation6 + $0x18] sm:$0xff] }
  0x1d   :  { %146 = vmatpush.msra.mxu1 %v129_v16  ;;  %187 = vmatpush.msra.mxu2 %v178_v36  ;;  %v169_v48 = vld [vmem:[#allocation6 + $0x20] sm:$0xff]  ;;  %v167_v54 = vld [vmem:[#allocation6 + $0x10] sm:$0xff]  ;;  %v166_v55 = vld [vmem:[#allocation6 + $0x8] sm:$0xff] }
  0x1e   :  { %103 = vmatpush.msra.mxu0 %v82_v13  ;;  %228 = vmatpush.msra.mxu3 %v82_v13  ;;  %v165_v56 = vld [vmem:[#allocation6] sm:$0xff] }
  0x1f   :  { %147 = vmatpush.msra.mxu1 %v128_v18  ;;  %188 = vmatpush.msra.mxu2 %v177_v37  ;;  %v242_v57 = vld [vmem:[%s407_s4] ss:$0 sm:$0xff] }
  0x20   :  { %104 = vmatpush.msra.mxu0 %v81_v15  ;;  %229 = vmatpush.msra.mxu3 %v81_v15  ;;  %v243_v0 = vld [vmem:[%s409_s6] ss:$0 sm:$0xff] }
  0x21   :  { %148 = vmatpush.msra.mxu1 %v127_v20  ;;  %189 = vmatpush.msra.mxu2 %v176_v38 }
  0x22   :  { %105 = vmatpush.msra.mxu0 %v80_v17  ;;  %230 = vmatpush.msra.mxu3 %v80_v17 }
  0x23   :  { %149 = vmatpush.msra.mxu1 %v126_v22  ;;  %190 = vmatpush.msra.mxu2 %v175_v39 }
  0x24   :  { %106 = vmatpush.msra.mxu0 %v79_v19  ;;  %231 = vmatpush.msra.mxu3 %v79_v19 }
  0x25   :  { %150 = vmatpush.msra.mxu1 %v125_v24  ;;  %191 = vmatpush.msra.mxu2 %v174_v40 }
  0x26   :  { %107 = vmatpush.msra.mxu0 %v78_v21  ;;  %232 = vmatpush.msra.mxu3 %v78_v21 }
  0x27   :  { %151 = vmatpush.msra.mxu1 %v124_v26  ;;  %192 = vmatpush.msra.mxu2 %v173_v41 }
  0x28   :  { %108 = vmatpush.msra.mxu0 %v77_v23  ;;  %233 = vmatpush.msra.mxu3 %v77_v23 }
  0x29   :  { %152 = vmatpush.msra.mxu1 %v123_v30  ;;  %193 = vmatpush.msra.mxu2 %v172_v42 }
  0x2a   :  { %109 = vmatpush.msra.mxu0 %v76_v25  ;;  %234 = vmatpush.msra.mxu3 %v76_v25 }
  0x2b   :  { %153 = vmatpush.msra.mxu1 %v122_v31  ;;  %194 = vmatpush.msra.mxu2 %v171_v44 }
  0x2c   :  { %110 = vmatpush.msra.mxu0 %v75_v27  ;;  %235 = vmatpush.msra.mxu3 %v75_v27 }
  0x2d   :  { %111 = vmatmul.f32.vlgmr.msra.gmra.mxu0 %v377_v28  ;;  %114 = vmatmul.f32.vlgmr.msra.gmra.mxu3 %v382_v29 }
  0x2e   :  { %154 = vmatpush.msra.mxu1 %v121_v32  ;;  %195 = vmatpush.msra.mxu2 %v170_v45 }
  0x30   :  { %155 = vmatpush.msra.mxu1 %v120_v33  ;;  %196 = vmatpush.msra.mxu2 %v169_v48 }
  0x32   :  { %197 = vmatpush.msra.mxu2 %v168_v50 }
  0x34   :  { %198 = vmatpush.msra.mxu2 %v167_v54 }
  0x36   :  { %199 = vmatpush.msra.mxu2 %v166_v55 }
  0x38   :  { %200 = vmatpush.msra.mxu2 %v165_v56 }
  0xaa   :  { %v112_v46 = vpop.f32.mrf.mxu0 }
  0xab   :  { %v113_v47 = vadd.f32 %v241_v43, %v112_v46 }
  0xad   :  { %v118_v49 = vmax.f32 %v113_v47, 0.0 }
  0xaf   :  { %156 = vmatmul.f32.vlgmr.msra.gmra.mxu1 %v118_v49 }
  0xb0   :  { %v115_v51 = vpop.f32.mrf.mxu3 }
  0xb1   :  { %v116_v52 = vadd.f32 %v241_v43, %v115_v51 }
  0xb3   :  { %v119_v53 = vmax.f32 %v116_v52, 0.0 }
  0xb7   :  { %159 = vmatmul.f32.gmra.mxu1 %v119_v53 }
 0x12c   :  { %v157_v58 = vpop.f32.mrf.mxu1 }
 0x12d   :  { %v158_v59 = vadd.f32 %v242_v57, %v157_v58 }
 0x12f   :  { %v163_v60 = vmax.f32 %v158_v59, 0.0 }
 0x131   :  { %201 = vmatmul.f32.vlgmr.msra.gmra.mxu2 %v163_v60 }
 0x134   :  { %v160_v61 = vpop.f32.mrf.mxu1 }
 0x135   :  { %v161_v62 = vadd.f32 %v242_v57, %v160_v61 }
 0x137   :  { %v164_v63 = vmax.f32 %v161_v62, 0.0 }
 0x139   :  { %204 = vmatmul.f32.gmra.mxu2 %v164_v63 }
 0x1b4   :  { %v202_v1 = vpop.f32.mrf.mxu2 }
 0x1b5   :  { %v203_v2 = vadd.f32 %v243_v0, %v202_v1 }
 0x1b7   :  { %v208_v3 = vadd.f32 %v203_v2, %v377_v28 }
 0x1b9   :  { %v210_v4 = vmax.f32 %v208_v3, 0.0 }
 0x1bb   :  { %212 = vst [vmem:[%s410_s7] sm:$0xff] %v210_v4 }
 0x1bc   :  { %v205_v5 = vpop.f32.mrf.mxu2 }
 0x1bd   :  { %v206_v6 = vadd.f32 %v243_v0, %v205_v5 }
 0x1bf   :  { %v209_v7 = vadd.f32 %v206_v6, %v382_v29 }
 0x1c1   :  { %v211_v8 = vmax.f32 %v209_v7, 0.0 }
 0x1c3   :  { %213 = vst [vmem:[%s410_s7 + $0x8] sm:$0xff] %v211_v8 }
 0x1c4   :  { %218 = vsyncpa [#allocation3], 1 }
 0x1c5   :  { %219 = vsyncpa [#allocation5], 1 }

</bundles_post_ra>
